<compile_context>
chip_gen: v7x
topology: tpu7x:2x2x1
jax: 0.10.0
libtpu: 0.0.40
codegen_flags: <defaults>
</compile_context>

<pallas_src>
import functools
import math

import jax
import jax.numpy as jnp
from jax.experimental import pallas as pl
from jax.experimental.pallas import tpu as pltpu


# ----------------------------------------------------------------------------
# Generation-aware tuning
# ----------------------------------------------------------------------------
def _vmem_capacity_bytes():
    try:
        return int(pltpu.get_tpu_info().vmem_capacity_bytes)
    except Exception:
        return 64 * 1024 * 1024  # conservative (v7x-sized) fallback


_VMEM_CAP = _vmem_capacity_bytes()
_VMEM_LIMIT = min((_VMEM_CAP * 3) // 4, 112 * 1024 * 1024)  # 48 MiB on v7x, 96 MiB on v5e/v6e
_ROW_TILE_TARGET = 1024 if _VMEM_CAP >= 128 * 1024 * 1024 else 512
_MXU_DTYPE = jnp.bfloat16  # MXU operand dtype; accumulation stays f32


def _row_tile(n, target=_ROW_TILE_TARGET):
    """Largest multiple-of-8 row tile <= target that divides n (unmasked stores)."""
    if n <= 8:
        return n
    t = min(target, n)
    t -= t % 8
    for cand in range(t, 7, -8):
        if n % cand == 0:
            return cand
    return n  # no multiple-of-8 divisor; full extent is always a legal block


# ----------------------------------------------------------------------------
# Pallas kernels
# ----------------------------------------------------------------------------
def _mha_res_ln_kernel(x_ref, wqkv_ref, bqkv_ref, wo_ref, bo_ref, g_ref, be_ref,
                       out_ref, *opt_a_ref, n_heads, d_head, scale, eps):
    """Fused: LayerNorm1(x + concat_heads(softmax(QK^T)V) @ Wo + bo), one batch/step."""
    a_ref = opt_a_ref[0] if opt_a_ref else None
    x = x_ref[0].astype(jnp.float32)                       # (L, D)
    d_model = n_heads * d_head

    # Fused QKV projection: one (L, D) @ (D, 3D) bf16 matmul, f32 accumulation.
    qkv = jnp.dot(x.astype(_MXU_DTYPE), wqkv_ref[...],
                  preferred_element_type=jnp.float32)       # (L, 3D)
    qkv = qkv + bqkv_ref[...]

    heads = []
    for h in range(n_heads):  # static unroll, n_heads is small
        lo = h * d_head
        q = qkv[:, lo:lo + d_head] * scale                  # scale on q: O(L*dh)
        k = qkv[:, d_model + lo:d_model + lo + d_head]
        v = qkv[:, 2 * d_model + lo:2 * d_model + lo + d_head]
        # Q @ K^T without materializing a transpose.
        s = jax.lax.dot_general(
            q.astype(_MXU_DTYPE), k.astype(_MXU_DTYPE),
            (((1,), (1,)), ((), ())), preferred_element_type=jnp.float32)  # (L, L)
        s = s - jnp.max(s, axis=-1, keepdims=True)
        p = jnp.exp(s)
        p = p / jnp.sum(p, axis=-1, keepdims=True)          # exact divide (parity)
        if a_ref is not None:
            a_ref[0, h] = p.astype(a_ref.dtype)
        o = jnp.dot(p.astype(_MXU_DTYPE), v.astype(_MXU_DTYPE),
                    preferred_element_type=jnp.float32)     # (L, dh)
        heads.append(o)

    # concat-heads @ Wo: one matmul with K = D (not H matmuls with K = dh).
    o_cat = jnp.concatenate(heads, axis=-1)                 # (L, D)
    y = jnp.dot(o_cat.astype(_MXU_DTYPE), wo_ref[...],
                preferred_element_type=jnp.float32)
    y = y + bo_ref[...] + x                                  # bias + residual

    mean = jnp.mean(y, axis=-1, keepdims=True)
    var = jnp.mean((y - mean) ** 2, axis=-1, keepdims=True)  # biased, matches torch LN
    yn = (y - mean) * jax.lax.rsqrt(var + eps)
    out_ref[0] = (yn * g_ref[...] + be_ref[...]).astype(out_ref.dtype)


def mha_residual_layernorm(x, wqkv, bqkv, wo, bo, gamma, beta, n_heads,
                           output_attention=True, eps=1e-5):
    """x: (B, L, D) -> (LayerNorm1(x + MHA(x)), attn or None)."""
    B, L, D = x.shape
    dh = D // n_heads
    kernel = functools.partial(_mha_res_ln_kernel, n_heads=n_heads, d_head=dh,
                               scale=1.0 / math.sqrt(dh), eps=eps)
    out_shapes = [jax.ShapeDtypeStruct((B, L, D), x.dtype)]
    out_specs = [pl.BlockSpec((1, L, D), lambda b: (b, 0, 0))]
    if output_attention:
        out_shapes.append(jax.ShapeDtypeStruct((B, n_heads, L, L), jnp.float32))
        out_specs.append(pl.BlockSpec((1, n_heads, L, L), lambda b: (b, 0, 0, 0)))
    res = pl.pallas_call(
        kernel,
        out_shape=tuple(out_shapes),
        grid=(B,),
        in_specs=[
            pl.BlockSpec((1, L, D), lambda b: (b, 0, 0)),
            pl.BlockSpec((D, 3 * D), lambda b: (0, 0)),
            pl.BlockSpec((1, 3 * D), lambda b: (0, 0)),
            pl.BlockSpec((D, D), lambda b: (0, 0)),
            pl.BlockSpec((1, D), lambda b: (0, 0)),
            pl.BlockSpec((1, D), lambda b: (0, 0)),
            pl.BlockSpec((1, D), lambda b: (0, 0)),
        ],
        out_specs=tuple(out_specs),
        compiler_params=pltpu.CompilerParams(
            dimension_semantics=("parallel",), vmem_limit_bytes=_VMEM_LIMIT),
    )(x, wqkv, bqkv, wo, bo, gamma, beta)
    if output_attention:
        out, attn = res
        return out, attn
    (out,) = res
    return out, None


def _linear_kernel(x_ref, w_ref, b_ref, o_ref, *, activation):
    y = jnp.dot(x_ref[...].astype(_MXU_DTYPE), w_ref[...],
                preferred_element_type=jnp.float32)
    y = y + b_ref[...]
    if activation == "relu":
        y = jnp.maximum(y, 0.0)
    o_ref[...] = y.astype(o_ref.dtype)


def linear(x, w, b, activation=None):
    """y = act(x @ w + b).  x: (N, D_in) f32, w: (D_in, D_out) bf16, b: (1, D_out) f32."""
    N, d_in = x.shape
    d_out = w.shape[1]
    t = _row_tile(N)
    kernel = functools.partial(_linear_kernel, activation=activation)
    return pl.pallas_call(
        kernel,
        out_shape=jax.ShapeDtypeStruct((N, d_out), x.dtype),
        grid=(N // t,),
        in_specs=[
            pl.BlockSpec((t, d_in), lambda i: (i, 0)),
            pl.BlockSpec((d_in, d_out), lambda i: (0, 0)),
            pl.BlockSpec((1, d_out), lambda i: (0, 0)),
        ],
        out_specs=pl.BlockSpec((t, d_out), lambda i: (i, 0)),
        compiler_params=pltpu.CompilerParams(
            dimension_semantics=("parallel",), vmem_limit_bytes=_VMEM_LIMIT),
    )(x, w, b)


def _linear_res_ln_kernel(x_ref, w_ref, b_ref, r_ref, g_ref, be_ref, o_ref, *, eps):
    # y = LayerNorm(x @ w + b + residual)
    y = jnp.dot(x_ref[...].astype(_MXU_DTYPE), w_ref[...],
                preferred_element_type=jnp.float32)
    y = y + b_ref[...] + r_ref[...].astype(jnp.float32)
    mean = jnp.mean(y, axis=-1, keepdims=True)
    var = jnp.mean((y - mean) ** 2, axis=-1, keepdims=True)
    yn = (y - mean) * jax.lax.rsqrt(var + eps)
    o_ref[...] = (yn * g_ref[...] + be_ref[...]).astype(o_ref.dtype)


def linear_residual_layernorm(x, w, b, res, gamma, beta, eps=1e-5):
    """LayerNorm(x @ w + b + res).  x: (N, D_in), res: (N, D_out)."""
    N, d_in = x.shape
    d_out = w.shape[1]
    t = _row_tile(N)
    kernel = functools.partial(_linear_res_ln_kernel, eps=eps)
    return pl.pallas_call(
        kernel,
        out_shape=jax.ShapeDtypeStruct((N, d_out), x.dtype),
        grid=(N // t,),
        in_specs=[
            pl.BlockSpec((t, d_in), lambda i: (i, 0)),
            pl.BlockSpec((d_in, d_out), lambda i: (0, 0)),
            pl.BlockSpec((1, d_out), lambda i: (0, 0)),
            pl.BlockSpec((t, d_out), lambda i: (i, 0)),
            pl.BlockSpec((1, d_out), lambda i: (0, 0)),
            pl.BlockSpec((1, d_out), lambda i: (0, 0)),
        ],
        out_specs=pl.BlockSpec((t, d_out), lambda i: (i, 0)),
        compiler_params=pltpu.CompilerParams(
            dimension_semantics=("parallel",), vmem_limit_bytes=_VMEM_LIMIT),
    )(x, w, b, res, gamma, beta)


def _layernorm_kernel(x_ref, g_ref, b_ref, o_ref, *, eps):
    x = x_ref[...].astype(jnp.float32)
    mean = jnp.mean(x, axis=-1, keepdims=True)
    var = jnp.mean((x - mean) ** 2, axis=-1, keepdims=True)
    y = (x - mean) * jax.lax.rsqrt(var + eps)
    o_ref[...] = (y * g_ref[...] + b_ref[...]).astype(o_ref.dtype)


def layernorm(x, gamma, beta, eps=1e-5):
    """LayerNorm over last dim.  x: (N, D), gamma/beta: (1, D)."""
    N, D = x.shape
    t = _row_tile(N)
    kernel = functools.partial(_layernorm_kernel, eps=eps)
    return pl.pallas_call(
        kernel,
        out_shape=jax.ShapeDtypeStruct((N, D), x.dtype),
        grid=(N // t,),
        in_specs=[
            pl.BlockSpec((t, D), lambda i: (i, 0)),
            pl.BlockSpec((1, D), lambda i: (0, 0)),
            pl.BlockSpec((1, D), lambda i: (0, 0)),
        ],
        out_specs=pl.BlockSpec((t, D), lambda i: (i, 0)),
        compiler_params=pltpu.CompilerParams(
            dimension_semantics=("parallel",), vmem_limit_bytes=_VMEM_LIMIT),
    )(x, gamma, beta)


# ----------------------------------------------------------------------------
# Model composition (glue in plain JAX — free reshapes only; compute in kernels)
# ----------------------------------------------------------------------------
def encoder_layer_forward(x, p, n_heads, output_attention=True):
    """One Informer EncoderLayer: self-attn + residual + LN1 + FFN + residual + LN2."""
    B, L, D = x.shape
    # Fused MHA + output projection + bias + residual + LayerNorm1 (single kernel;
    # no HBM relayout of qkv, no HBM round trip of the per-head attention output).
    x1, attn = mha_residual_layernorm(
        x, p["wqkv"], p["bqkv"], p["wo"], p["bo"], p["ln1_g"], p["ln1_b"],
        n_heads, output_attention=output_attention)

    # FFN (Conv1d kernel_size=1 ≡ linear): linear1+ReLU, then linear2 fused with
    # bias + residual + LayerNorm2.
    x1f = x1.reshape(B * L, D)
    y = linear(x1f, p["w1"], p["b1"], activation="relu")
    x2 = linear_residual_layernorm(
        y, p["w2"], p["b2"], x1f, p["ln2_g"], p["ln2_b"]).reshape(B, L, D)
    return x2, attn


def encoder_forward(x, params, n_heads, attn_mask=None, output_attention=True):
    """Encoder.forward: returns (x, attentions)."""
    assert attn_mask is None  # TODO(synk): additive attn_mask (Informer encoder is unmasked)
    attentions = []
    for layer_params in params["layers"]:
        x, attn = encoder_layer_forward(x, layer_params, n_heads,
                                        output_attention=output_attention)
        attentions.append(attn)
    B, L, D = x.shape
    x = layernorm(x.reshape(B * L, D), params["norm_g"], params["norm_b"]).reshape(B, L, D)
    return x, attentions


def init_params(key, num_layers, d_model, d_ff):
    params = {"layers": []}
    for l in range(num_layers):
        keys = jax.random.split(jax.random.fold_in(key, l), 6)
        s_d = 1.0 / math.sqrt(d_model)
        s_f = 1.0 / math.sqrt(d_ff)
        wq = jax.random.normal(keys[0], (d_model, d_model), jnp.float32) * s_d
        wk = jax.random.normal(keys[1], (d_model, d_model), jnp.float32) * s_d
        wv = jax.random.normal(keys[2], (d_model, d_model), jnp.float32) * s_d
        lp = {
            # fused QKV weight/bias (concatenation of the separate projections);
            # weights stored bf16 for MXU throughput + halved DMA, biases/LN f32.
            "wqkv": jnp.concatenate([wq, wk, wv], axis=1).astype(_MXU_DTYPE),
            "bqkv": jnp.zeros((1, 3 * d_model), jnp.float32),
            "wo": (jax.random.normal(keys[3], (d_model, d_model), jnp.float32) * s_d
                   ).astype(_MXU_DTYPE),
            "bo": jnp.zeros((1, d_model), jnp.float32),
            "w1": (jax.random.normal(keys[4], (d_model, d_ff), jnp.float32) * s_d
                   ).astype(_MXU_DTYPE),
            "b1": jnp.zeros((1, d_ff), jnp.float32),
            "w2": (jax.random.normal(keys[5], (d_ff, d_model), jnp.float32) * s_f
                   ).astype(_MXU_DTYPE),
            "b2": jnp.zeros((1, d_model), jnp.float32),
            "ln1_g": jnp.ones((1, d_model), jnp.float32),
            "ln1_b": jnp.zeros((1, d_model), jnp.float32),
            "ln2_g": jnp.ones((1, d_model), jnp.float32),
            "ln2_b": jnp.zeros((1, d_model), jnp.float32),
        }
        params["layers"].append(lp)
    params["norm_g"] = jnp.ones((1, d_model), jnp.float32)
    params["norm_b"] = jnp.zeros((1, d_model), jnp.float32)
    return params


if __name__ == "__main__":
    B, L, D, H, D_FF, N_LAYERS = 2, 8, 32, 2, 64, 2

    x = jax.random.normal(jax.random.PRNGKey(0), (B, L, D), dtype=jnp.float32)
    params = init_params(jax.random.PRNGKey(1), N_LAYERS, D, D_FF)

    out, attentions = encoder_forward(x, params, n_heads=H, attn_mask=None,
                                      output_attention=True)

    jax.block_until_ready(out)
    for a in attentions:
        jax.block_until_ready(a)

    assert out.shape == (B, L, D)
    assert len(attentions) == N_LAYERS
    assert all(a.shape == (B, H, L, L) for a in attentions)
    assert bool(jnp.all(jnp.isfinite(out)))
    print("KERNEL_OK")
</pallas_src>

<mosaic_0001>
module attributes {stable_mosaic.version = 11 : i64} {
  func.func @_mha_res_ln_kernel(%arg0: i32, %arg1: memref<1x8x32xf32, #tpu.memory_space<vmem>>, %arg2: memref<32x96xbf16, #tpu.memory_space<vmem>>, %arg3: memref<1x96xf32, #tpu.memory_space<vmem>>, %arg4: memref<32x32xbf16, #tpu.memory_space<vmem>>, %arg5: memref<1x32xf32, #tpu.memory_space<vmem>>, %arg6: memref<1x32xf32, #tpu.memory_space<vmem>>, %arg7: memref<1x32xf32, #tpu.memory_space<vmem>>, %arg8: memref<1x8x32xf32, #tpu.memory_space<vmem>>, %arg9: memref<1x2x8x8xf32, #tpu.memory_space<vmem>>) attributes {dimension_semantics = [#tpu.dimension_semantics<parallel>], iteration_bounds = array<i64: 2>, scalar_prefetch = 0 : i64, scratch_operands = 0 : i64, tpu.core_type = #tpu.core_type<tc>, window_params = [{transform_indices = @transform_0, window_bounds = array<i64: 1, 8, 32>}, {pipeline_mode = #tpu.pipeline_mode<synchronous>, transform_indices = @transform_1, window_bounds = array<i64: 32, 96>}, {pipeline_mode = #tpu.pipeline_mode<synchronous>, transform_indices = @transform_2, window_bounds = array<i64: 1, 96>}, {pipeline_mode = #tpu.pipeline_mode<synchronous>, transform_indices = @transform_3, window_bounds = array<i64: 32, 32>}, {pipeline_mode = #tpu.pipeline_mode<synchronous>, transform_indices = @transform_4, window_bounds = array<i64: 1, 32>}, {pipeline_mode = #tpu.pipeline_mode<synchronous>, transform_indices = @transform_5, window_bounds = array<i64: 1, 32>}, {pipeline_mode = #tpu.pipeline_mode<synchronous>, transform_indices = @transform_6, window_bounds = array<i64: 1, 32>}, {transform_indices = @transform_7, window_bounds = array<i64: 1, 8, 32>}, {transform_indices = @transform_8, window_bounds = array<i64: 1, 2, 8, 8>}]} {
    %c0 = arith.constant 0 : index
    %c0_0 = arith.constant 0 : index
    %c0_1 = arith.constant 0 : index
    %0 = vector.load %arg1[%c0, %c0_0, %c0_1] : memref<1x8x32xf32, #tpu.memory_space<vmem>>, vector<1x8x32xf32>
    %1 = vector.shape_cast %0 : vector<1x8x32xf32> to vector<8x32xf32>
    %2 = arith.truncf %1 : vector<8x32xf32> to vector<8x32xbf16>
    %c0_2 = arith.constant 0 : index
    %c0_3 = arith.constant 0 : index
    %3 = vector.load %arg2[%c0_2, %c0_3] : memref<32x96xbf16, #tpu.memory_space<vmem>>, vector<32x96xbf16>
    %cst = arith.constant dense<0.000000e+00> : vector<8x96xf32>
    %4 = tpu.matmul %2, %3, %cst {dimension_numbers = #tpu.dot_dimension_numbers<[1], [0], [0], [1], [0, 0, 1, 1], [], []>} : vector<8x32xbf16>, vector<32x96xbf16>, vector<8x96xf32> -> vector<8x96xf32>
    %c0_4 = arith.constant 0 : index
    %c0_5 = arith.constant 0 : index
    %5 = vector.load %arg3[%c0_4, %c0_5] : memref<1x96xf32, #tpu.memory_space<vmem>>, vector<1x96xf32>
    %6 = vector.broadcast %5 : vector<1x96xf32> to vector<8x96xf32>
    %7 = arith.addf %4, %6 : vector<8x96xf32>
    %8 = vector.extract_strided_slice %7 {offsets = [0, 0], sizes = [8, 16], strides = [1, 1]} : vector<8x96xf32> to vector<8x16xf32>
    %cst_6 = arith.constant 2.500000e-01 : f32
    %9 = vector.broadcast %cst_6 : f32 to vector<8x16xf32>
    %10 = arith.mulf %8, %9 : vector<8x16xf32>
    %11 = vector.extract_strided_slice %7 {offsets = [0, 32], sizes = [8, 16], strides = [1, 1]} : vector<8x96xf32> to vector<8x16xf32>
    %12 = vector.extract_strided_slice %7 {offsets = [0, 64], sizes = [8, 16], strides = [1, 1]} : vector<8x96xf32> to vector<8x16xf32>
    %13 = arith.truncf %10 : vector<8x16xf32> to vector<8x16xbf16>
    %14 = arith.truncf %11 : vector<8x16xf32> to vector<8x16xbf16>
    %cst_7 = arith.constant dense<0.000000e+00> : vector<8x8xf32>
    %15 = tpu.matmul %13, %14, %cst_7 {dimension_numbers = #tpu.dot_dimension_numbers<[1], [1], [0], [0], [0, 0, 1, 0], [], []>} : vector<8x16xbf16>, vector<8x16xbf16>, vector<8x8xf32> -> vector<8x8xf32>
    %cst_8 = arith.constant dense<0xFF800000> : vector<8xf32>
    %16 = vector.multi_reduction <maximumf>, %15, %cst_8 [1] : vector<8x8xf32> to vector<8xf32>
    %17 = vector.shape_cast %16 : vector<8xf32> to vector<8x1xf32>
    %18 = vector.broadcast %17 : vector<8x1xf32> to vector<8x8xf32>
    %19 = arith.subf %15, %18 : vector<8x8xf32>
    %20 = math.exp %19 : vector<8x8xf32>
    %cst_9 = arith.constant dense<0.000000e+00> : vector<8xf32>
    %21 = vector.multi_reduction <add>, %20, %cst_9 [1] : vector<8x8xf32> to vector<8xf32>
    %22 = vector.shape_cast %21 : vector<8xf32> to vector<8x1xf32>
    %23 = vector.broadcast %22 : vector<8x1xf32> to vector<8x8xf32>
    %24 = arith.divf %20, %23 : vector<8x8xf32>
    %c0_10 = arith.constant 0 : index
    %c0_11 = arith.constant 0 : index
    %c0_12 = arith.constant 0 : index
    %c0_13 = arith.constant 0 : index
    %25 = vector.load %arg9[%c0_10, %c0_11, %c0_12, %c0_13] : memref<1x2x8x8xf32, #tpu.memory_space<vmem>>, vector<1x1x8x8xf32>
    %26 = vector.shape_cast %25 : vector<1x1x8x8xf32> to vector<8x8xf32>
    %27 = vector.shape_cast %24 : vector<8x8xf32> to vector<1x1x8x8xf32>
    tpu.vector_store %arg9[%c0_10, %c0_11, %c0_12, %c0_13], %27 {strides = array<i32>} : memref<1x2x8x8xf32, #tpu.memory_space<vmem>>, vector<1x1x8x8xf32>,
    %28 = arith.truncf %24 : vector<8x8xf32> to vector<8x8xbf16>
    %29 = arith.truncf %12 : vector<8x16xf32> to vector<8x16xbf16>
    %cst_14 = arith.constant dense<0.000000e+00> : vector<8x16xf32>
    %30 = tpu.matmul %28, %29, %cst_14 {dimension_numbers = #tpu.dot_dimension_numbers<[1], [0], [0], [1], [0, 0, 1, 1], [], []>} : vector<8x8xbf16>, vector<8x16xbf16>, vector<8x16xf32> -> vector<8x16xf32>
    %31 = vector.extract_strided_slice %7 {offsets = [0, 16], sizes = [8, 16], strides = [1, 1]} : vector<8x96xf32> to vector<8x16xf32>
    %cst_15 = arith.constant 2.500000e-01 : f32
    %32 = vector.broadcast %cst_15 : f32 to vector<8x16xf32>
    %33 = arith.mulf %31, %32 : vector<8x16xf32>
    %34 = vector.extract_strided_slice %7 {offsets = [0, 48], sizes = [8, 16], strides = [1, 1]} : vector<8x96xf32> to vector<8x16xf32>
    %35 = vector.extract_strided_slice %7 {offsets = [0, 80], sizes = [8, 16], strides = [1, 1]} : vector<8x96xf32> to vector<8x16xf32>
    %36 = arith.truncf %33 : vector<8x16xf32> to vector<8x16xbf16>
    %37 = arith.truncf %34 : vector<8x16xf32> to vector<8x16xbf16>
    %cst_16 = arith.constant dense<0.000000e+00> : vector<8x8xf32>
    %38 = tpu.matmul %36, %37, %cst_16 {dimension_numbers = #tpu.dot_dimension_numbers<[1], [1], [0], [0], [0, 0, 1, 0], [], []>} : vector<8x16xbf16>, vector<8x16xbf16>, vector<8x8xf32> -> vector<8x8xf32>
    %cst_17 = arith.constant dense<0xFF800000> : vector<8xf32>
    %39 = vector.multi_reduction <maximumf>, %38, %cst_17 [1] : vector<8x8xf32> to vector<8xf32>
    %40 = vector.shape_cast %39 : vector<8xf32> to vector<8x1xf32>
    %41 = vector.broadcast %40 : vector<8x1xf32> to vector<8x8xf32>
    %42 = arith.subf %38, %41 : vector<8x8xf32>
    %43 = math.exp %42 : vector<8x8xf32>
    %cst_18 = arith.constant dense<0.000000e+00> : vector<8xf32>
    %44 = vector.multi_reduction <add>, %43, %cst_18 [1] : vector<8x8xf32> to vector<8xf32>
    %45 = vector.shape_cast %44 : vector<8xf32> to vector<8x1xf32>
    %46 = vector.broadcast %45 : vector<8x1xf32> to vector<8x8xf32>
    %47 = arith.divf %43, %46 : vector<8x8xf32>
    %c0_19 = arith.constant 0 : index
    %c1 = arith.constant 1 : index
    %c0_20 = arith.constant 0 : index
    %c0_21 = arith.constant 0 : index
    %48 = vector.load %arg9[%c0_19, %c1, %c0_20, %c0_21] : memref<1x2x8x8xf32, #tpu.memory_space<vmem>>, vector<1x1x8x8xf32>
    %49 = vector.shape_cast %48 : vector<1x1x8x8xf32> to vector<8x8xf32>
    %50 = vector.shape_cast %47 : vector<8x8xf32> to vector<1x1x8x8xf32>
    tpu.vector_store %arg9[%c0_19, %c1, %c0_20, %c0_21], %50 {strides = array<i32>} : memref<1x2x8x8xf32, #tpu.memory_space<vmem>>, vector<1x1x8x8xf32>,
    %51 = arith.truncf %47 : vector<8x8xf32> to vector<8x8xbf16>
    %52 = arith.truncf %35 : vector<8x16xf32> to vector<8x16xbf16>
    %cst_22 = arith.constant dense<0.000000e+00> : vector<8x16xf32>
    %53 = tpu.matmul %51, %52, %cst_22 {dimension_numbers = #tpu.dot_dimension_numbers<[1], [0], [0], [1], [0, 0, 1, 1], [], []>} : vector<8x8xbf16>, vector<8x16xbf16>, vector<8x16xf32> -> vector<8x16xf32>
    %54 = tpu.concatenate %30, %53 in 1 : vector<8x16xf32>, vector<8x16xf32> -> vector<8x32xf32>
    %55 = arith.truncf %54 : vector<8x32xf32> to vector<8x32xbf16>
    %c0_23 = arith.constant 0 : index
    %c0_24 = arith.constant 0 : index
    %56 = vector.load %arg4[%c0_23, %c0_24] : memref<32x32xbf16, #tpu.memory_space<vmem>>, vector<32x32xbf16>
    %cst_25 = arith.constant dense<0.000000e+00> : vector<8x32xf32>
    %57 = tpu.matmul %55, %56, %cst_25 {dimension_numbers = #tpu.dot_dimension_numbers<[1], [0], [0], [1], [0, 0, 1, 1], [], []>} : vector<8x32xbf16>, vector<32x32xbf16>, vector<8x32xf32> -> vector<8x32xf32>
    %c0_26 = arith.constant 0 : index
    %c0_27 = arith.constant 0 : index
    %58 = vector.load %arg5[%c0_26, %c0_27] : memref<1x32xf32, #tpu.memory_space<vmem>>, vector<1x32xf32>
    %59 = vector.broadcast %58 : vector<1x32xf32> to vector<8x32xf32>
    %60 = arith.addf %57, %59 : vector<8x32xf32>
    %61 = arith.addf %60, %1 : vector<8x32xf32>
    %cst_28 = arith.constant dense<0.000000e+00> : vector<8xf32>
    %62 = vector.multi_reduction <add>, %61, %cst_28 [1] : vector<8x32xf32> to vector<8xf32>
    %63 = vector.shape_cast %62 : vector<8xf32> to vector<8x1xf32>
    %cst_29 = arith.constant 3.200000e+01 : f32
    %64 = vector.broadcast %cst_29 : f32 to vector<8x1xf32>
    %65 = arith.divf %63, %64 : vector<8x1xf32>
    %66 = vector.broadcast %65 : vector<8x1xf32> to vector<8x32xf32>
    %67 = arith.subf %61, %66 : vector<8x32xf32>
    %68 = arith.mulf %67, %67 : vector<8x32xf32>
    %cst_30 = arith.constant dense<0.000000e+00> : vector<8xf32>
    %69 = vector.multi_reduction <add>, %68, %cst_30 [1] : vector<8x32xf32> to vector<8xf32>
    %70 = vector.shape_cast %69 : vector<8xf32> to vector<8x1xf32>
    %cst_31 = arith.constant 3.200000e+01 : f32
    %71 = vector.broadcast %cst_31 : f32 to vector<8x1xf32>
    %72 = arith.divf %70, %71 : vector<8x1xf32>
    %73 = vector.broadcast %65 : vector<8x1xf32> to vector<8x32xf32>
    %74 = arith.subf %61, %73 : vector<8x32xf32>
    %cst_32 = arith.constant 9.99999974E-6 : f32
    %75 = vector.broadcast %cst_32 : f32 to vector<8x1xf32>
    %76 = arith.addf %72, %75 : vector<8x1xf32>
    %77 = math.rsqrt %76 : vector<8x1xf32>
    %78 = vector.broadcast %77 : vector<8x1xf32> to vector<8x32xf32>
    %79 = arith.mulf %74, %78 : vector<8x32xf32>
    %c0_33 = arith.constant 0 : index
    %c0_34 = arith.constant 0 : index
    %80 = vector.load %arg6[%c0_33, %c0_34] : memref<1x32xf32, #tpu.memory_space<vmem>>, vector<1x32xf32>
    %81 = vector.broadcast %80 : vector<1x32xf32> to vector<8x32xf32>
    %82 = arith.mulf %79, %81 : vector<8x32xf32>
    %c0_35 = arith.constant 0 : index
    %c0_36 = arith.constant 0 : index
    %83 = vector.load %arg7[%c0_35, %c0_36] : memref<1x32xf32, #tpu.memory_space<vmem>>, vector<1x32xf32>
    %84 = vector.broadcast %83 : vector<1x32xf32> to vector<8x32xf32>
    %85 = arith.addf %82, %84 : vector<8x32xf32>
    %c0_37 = arith.constant 0 : index
    %c0_38 = arith.constant 0 : index
    %c0_39 = arith.constant 0 : index
    %86 = vector.load %arg8[%c0_37, %c0_38, %c0_39] : memref<1x8x32xf32, #tpu.memory_space<vmem>>, vector<1x8x32xf32>
    %87 = vector.shape_cast %86 : vector<1x8x32xf32> to vector<8x32xf32>
    %88 = vector.shape_cast %85 : vector<8x32xf32> to vector<1x8x32xf32>
    tpu.vector_store %arg8[%c0_37, %c0_38, %c0_39], %88 {strides = array<i32>} : memref<1x8x32xf32, #tpu.memory_space<vmem>>, vector<1x8x32xf32>,
    return
  }
  func.func @transform_0(%arg0: i32) -> (i32, i32, i32) {
    %c0_i32 = arith.constant 0 : i32
    %c0_i32_0 = arith.constant 0 : i32
    %c0_i32_1 = arith.constant 0 : i32
    return %arg0, %c0_i32, %c0_i32_0 : i32, i32, i32
  }
  func.func @transform_1(%arg0: i32) -> (i32, i32) {
    %c0_i32 = arith.constant 0 : i32
    %c0_i32_0 = arith.constant 0 : i32
    %c0_i32_1 = arith.constant 0 : i32
    return %c0_i32, %c0_i32_0 : i32, i32
  }
  func.func @transform_2(%arg0: i32) -> (i32, i32) {
    %c0_i32 = arith.constant 0 : i32
    %c0_i32_0 = arith.constant 0 : i32
    %c0_i32_1 = arith.constant 0 : i32
    return %c0_i32, %c0_i32_0 : i32, i32
  }
  func.func @transform_3(%arg0: i32) -> (i32, i32) {
    %c0_i32 = arith.constant 0 : i32
    %c0_i32_0 = arith.constant 0 : i32
    %c0_i32_1 = arith.constant 0 : i32
    return %c0_i32, %c0_i32_0 : i32, i32
  }
  func.func @transform_4(%arg0: i32) -> (i32, i32) {
    %c0_i32 = arith.constant 0 : i32
    %c0_i32_0 = arith.constant 0 : i32
    %c0_i32_1 = arith.constant 0 : i32
    return %c0_i32, %c0_i32_0 : i32, i32
  }
  func.func @transform_5(%arg0: i32) -> (i32, i32) {
    %c0_i32 = arith.constant 0 : i32
    %c0_i32_0 = arith.constant 0 : i32
    %c0_i32_1 = arith.constant 0 : i32
    return %c0_i32, %c0_i32_0 : i32, i32
  }
  func.func @transform_6(%arg0: i32) -> (i32, i32) {
    %c0_i32 = arith.constant 0 : i32
    %c0_i32_0 = arith.constant 0 : i32
    %c0_i32_1 = arith.constant 0 : i32
    return %c0_i32, %c0_i32_0 : i32, i32
  }
  func.func @transform_7(%arg0: i32) -> (i32, i32, i32) {
    %c0_i32 = arith.constant 0 : i32
    %c0_i32_0 = arith.constant 0 : i32
    %c0_i32_1 = arith.constant 0 : i32
    return %arg0, %c0_i32, %c0_i32_0 : i32, i32, i32
  }
  func.func @transform_8(%arg0: i32) -> (i32, i32, i32, i32) {
    %c0_i32 = arith.constant 0 : i32
    %c0_i32_0 = arith.constant 0 : i32
    %c0_i32_1 = arith.constant 0 : i32
    %c0_i32_2 = arith.constant 0 : i32
    return %arg0, %c0_i32, %c0_i32_0, %c0_i32_1 : i32, i32, i32, i32
  }
}

</mosaic_0001>

<bundles_post_ra>
// kernel: tpu_custom_call.1
= control target key start
LH: loop header
LB: loop body
LE: loop exit
PB: predicated region body
PF: predicated region fallthrough
CT: control target
= control target key end

     0   :  { %14 = vsyncpa [#allocation3], 0  ;;  %s1686_s0 = inlined_call_operand.hbm [shape: f32[2,8,32], index: 0, kind: input, shape index: {}]   ;;  %s1687_s1 = inlined_call_operand.hbm [shape: bf16[32,96], index: 1, kind: input, shape index: {}]   ;;  %s1688_s2 = inlined_call_operand.vmem [shape: f32[1,96], index: 2, kind: input, shape index: {}]   ;;  %s1689_s3 = inlined_call_operand.hbm [shape: bf16[32,32], index: 3, kind: input, shape index: {}]   ;;  %s1690_s4 = inlined_call_operand.vmem [shape: f32[1,32], index: 4, kind: input, shape index: {}]   ;;  %s1691_s5 = inlined_call_operand.vmem [shape: f32[1,32], index: 5, kind: input, shape index: {}]   ;;  %s1692_s6 = inlined_call_operand.vmem [shape: f32[1,32], index: 6, kind: input, shape index: {}]   ;;  %s1693_s7 = inlined_call_operand.hbm [shape: f32[2,8,32], index: 7, kind: output, shape index: {0}]   ;;  %s1694_s8 = inlined_call_operand.hbm [shape: f32[2,2,8,8], index: 8, kind: output, shape index: {1}]  }
   0x1   :  { %16 = vsyncpa [#allocation3 + $0x1], 0 }
   0x2   :  { %17 = vsyncpa [#allocation6], 0 }
   0x3   :  { %18 = vsyncpa [#allocation4], 0 }
   0x4   :  { %20 = vsyncpa [#allocation4 + $0x1], 0 }
   0x5   :  { %21 = vsyncpa [#allocation10], 0 }
   0x6   :  { %23 = vsyncpa [#allocation10 + $0x1], 0  ;;  %s1360_s27 = smov 0   ;;  %s1362_s28 = smov 0  }
   0x7   :  { %s1364_s29 = smov 0   ;;  %s1366_s30 = smov 0  }
   0x8 LB: > { %s1381_s9 = sadd.s32 4294967295, %s1296_s30   ;;  %s920_s10 = sadd.s32 4294967294, %s1296_s30   ;;  %s1296_s30 = sphi %s1366_s30, %s1714_s30   ;;  %s1292_s29 = sphi %s1364_s29, %s1713_s29   ;;  %s1288_s28 = sphi %s1362_s28, %s1712_s28   ;;  %s1284_s27 = sphi %s1360_s27, %s1711_s27  }
   0x9   : > { %p49_p0 = scmp.ne.s32.totalorder %s1288_s28, %s1284_s27  ;;  %p1695_p1 = scmp.eq.s32.totalorder %s1381_s9, 0 }
   0xa   : > { %p205_p3 = scmp.eq.s32.totalorder %s920_s10, 1  ;;  %p921_p5 = scmp.ge.s32.totalorder %s1296_s30, 1 }
   0xb   : > { %p1390_p4 = por %p1695_p1, %p49_p0  ;;  %p238_p7 = scmp.lt.s32.totalorder %s1296_s30, 3 }
   0xc   : > { %p1395_p6 = por %p205_p3, %p49_p0  ;;  %s1298_s14 = smov [#allocation5]  }
   0xd   : > { %s1698_s11 = scalar_select %p1390_p4, 1, 0 }
   0xe   : > { %s1699_s12 = scalar_select %p1395_p6, 1, 0 }
   0xf   : > { %p1400_p8 = pnand %p921_p5, %p238_p7  ;;  %s250_s15 = sshll.u32 %s1298_s14, 4  ;;  %s1404_s15 = int_to_ptr.vmem [resolvable:$true] %s250_s15 }
  0x10   : > { %s1299_s17 = smov [#allocation7]   ;;  %s1108_s21 = scalar_lea.hbm %s1687_s1, 256 }
  0x11   : > { %p1024_p9 = pneg %p1400_p8  ;;  %s266_s18 = sshll.u32 %s1299_s17, 4  ;;  %s1415_s18 = int_to_ptr.vmem [resolvable:$true] %s266_s18 }
  0x12   : > { %p1109_p12 = scmp.ne.s32.totalorder %s1687_s1, %s1108_s21  ;;  %p1115_p5 = scmp.lt.u32.totalorder %s1108_s21, %s1687_s1 }
  0x13   : > { %p1411_p11 = pnand %p1024_p9, %p1695_p1 }
  0x15   : > { %p1110_p13 = pneg %p1411_p11 }
  0x17   : > { %p1111_p0 = pnand %p1110_p13, %p1109_p12 }
  0x19   : > { %p1112_p3 = pneg %p1111_p0 }
  0x1b   : > { %p1117_p7 = pnand %p1115_p5, %p1112_p3 }
  0x1d   : > { %1120 = shalt.err (!%p1117_p7)
}
  0x1e   : > { %s1121_s26 = scalar_lea.vmem %s1404_s15, 256  ;;  %p1129_p2 = scmp.lt.s32.totalorder %s1404_s15, %s1404_s15 }
  0x1f   : > { %p1122_p9 = scmp.ne.s32.totalorder %s1404_s15, %s1121_s26  ;;  %p1130_p12 = scmp.lt.s32.totalorder %s1121_s26, %s1121_s26 }
  0x21   : > { %p1124_p10 = pnand %p1122_p9, %p1110_p13  ;;  %p1131_p0 = por %p1130_p12, %p1129_p2 }
  0x23   : > { %p1125_p1 = pneg %p1124_p10 }
  0x25   : > { %p1132_p6 = pnand %p1131_p0, %p1125_p1 }
  0x27   : > { %1135 = shalt.err (!%p1132_p6)
}
  0x28   : > { %s1300_s10 = smov 64   ;;  %s1301_s14 = smov 4  }
  0x29   : > { %1027 = dma.hbm_to_vmem [thread:$0]  (!%p1411_p11), %s1687_s1, 256, %s1404_s15, [#allocation6], %s1300_s10, %s1300_s10, %s1301_s14  }
  0x2a   : > { %s1136_s22 = scalar_lea.hbm %s1689_s3, 256 }
  0x2b   : > { %p1137_p2 = scmp.ne.s32.totalorder %s1689_s3, %s1136_s22  ;;  %p1143_p10 = scmp.lt.u32.totalorder %s1136_s22, %s1689_s3 }
  0x2d   : > { %p1139_p1 = pnand %p1137_p2, %p1110_p13 }
  0x2f   : > { %p1140_p6 = pneg %p1139_p1 }
  0x31   : > { %p1145_p3 = pnand %p1143_p10, %p1140_p6 }
  0x33   : > { %1148 = shalt.err (!%p1145_p3)
}
  0x34   : > { %s1149_s15 = scalar_lea.vmem %s1415_s18, 256  ;;  %p1157_p12 = scmp.lt.s32.totalorder %s1415_s18, %s1415_s18 }
  0x35   : > { %p1150_p5 = scmp.ne.s32.totalorder %s1415_s18, %s1149_s15  ;;  %p1158_p0 = scmp.lt.s32.totalorder %s1149_s15, %s1149_s15 }
  0x37   : > { %p1152_p7 = pnand %p1150_p5, %p1110_p13  ;;  %p1159_p2 = por %p1158_p0, %p1157_p12 }
  0x39   : > { %p1153_p9 = pneg %p1152_p7 }
  0x3b   : > { %p1160_p1 = pnand %p1159_p2, %p1153_p9 }
  0x3d   : > { %1163 = shalt.err (!%p1160_p1)
}
  0x3e   : > { %1030 = dma.hbm_to_vmem [thread:$0]  (!%p1411_p11), %s1689_s3, 256, %s1415_s18, [#allocation6], %s1300_s10, %s1300_s10, %s1301_s14  }
  0x3f   : > { %s1470_s20 = sadd.s32 1, %s1296_s30   ;;  %s36_s16 = sadd.s32 1, %s1292_s29 }
  0x40   : > { %s33_s21 = ssub.s32 %s1296_s30, %s1470_s20  ;;  %p43_p13 = scmp.ne.s32.totalorder %s1292_s29, %s1288_s28 }
  0x41   : > { %p34_p6 = scmp.eq.s32.totalorder %s33_s21, 0  ;;  %p44_p10 = scmp.eq.s32.totalorder %s1296_s30, 0 }
  0x42   : > { %p1702_p3 = scmp.eq.s32.totalorder %s1381_s9, 1  ;;  %p1044_p7 = scmp.lt.s32.totalorder %s1296_s30, 2 }
  0x43   : > { %s1486_s23 = scalar_select %p34_p6, %s1292_s29, %s36_s16  }
  0x44   : > { %p1480_p5 = por %p1702_p3, %p43_p13  ;;  %p45_p9 = por %p44_p10, %p43_p13 }
  0x45   : > { %s289_s24 = sand.u32 1, %s1292_s29   ;;  %s926_s18 = sshll.u32 %s1296_s30, 7 }
  0x46   : > { %s1703_s22 = scalar_select %p1480_p5, 1, 0 }
  0x47   : > { %s925_s25 = sshll.u32 %s289_s24, 3  ;;  %s1493_s26 = scalar_lea.hbm %s1686_s0, %s926_s18 }
  0x48   : > { %s293_s15 = scalar_lea.vmem [#allocation2], %s925_s25  ;;  %p1497_p11 = pnand %p1044_p7, %p45_p9 }
  0x49   : > { %s300_s17 = sshll.u32 %s293_s15, 4  ;;  %s290_s16 = scalar_lea.sflag [#allocation3], %s289_s24  ;;  %s1495_s17 = int_to_ptr.vmem [resolvable:$true] %s300_s17 }
  0x4a   : > { %s1164_s21 = scalar_lea.hbm %s1493_s26, 128  ;;  %p1166_p0 = pneg %p1497_p11 }
  0x4b   : > { %p1165_p12 = scmp.ne.s32.totalorder %s1493_s26, %s1164_s21  ;;  %s1169_s10 = scalar_lea.hbm %s1686_s0, 256 }
  0x4c   : > { %p1170_p13 = scmp.lt.u32.totalorder %s1493_s26, %s1686_s0  ;;  %p1171_p6 = scmp.lt.u32.totalorder %s1169_s10, %s1164_s21 }
  0x4d   : > { %p1167_p2 = pnand %p1166_p0, %p1165_p12  ;;  %p1173_p3 = scmp.lt.u32.totalorder %s1164_s21, %s1493_s26 }
  0x4e   : > { %p1172_p10 = por %p1171_p6, %p1170_p13 }
  0x4f   : > { %p1168_p1 = pneg %p1167_p2 }
  0x50   : > { %p1174_p7 = por %p1173_p3, %p1172_p10 }
  0x52   : > { %p1175_p9 = pnand %p1174_p7, %p1168_p1 }
  0x54   : > { %1178 = shalt.err (!%p1175_p9)
}
  0x55   : > { %s1179_s24 = scalar_lea.vmem %s1495_s17, 128  ;;  %s1302_s18 = smov [#allocation2]  }
  0x56   : > { %p1180_p12 = scmp.ne.s32.totalorder %s1495_s17, %s1179_s24  ;;  %s1184_s25 = sshll.u32 %s1302_s18, 4  ;;  %s1185_s25 = int_to_ptr.vmem [resolvable:$false] %s1184_s25 }
  0x57   : > { %s1186_s14 = scalar_lea.vmem %s1185_s25, 256  ;;  %p1187_p4 = scmp.lt.s32.totalorder %s1495_s17, %s1185_s25 }
  0x58   : > { %p1182_p2 = pnand %p1180_p12, %p1166_p0  ;;  %p1188_p13 = scmp.lt.s32.totalorder %s1186_s14, %s1179_s24 }
  0x5a   : > { %p1183_p5 = pneg %p1182_p2  ;;  %p1189_p6 = por %p1188_p13, %p1187_p4 }
  0x5c   : > { %p1190_p10 = pnand %p1189_p6, %p1183_p5 }
  0x5e   : > { %1193 = shalt.err (!%p1190_p10)
}
  0x5f   : > { %1034 = dma.hbm_to_vmem [thread:$0]  (!%p1497_p11), %s1493_s26, 128, %s1495_s17, %s290_s16  }
  0x60   : > { %309 = sbr.rel (%p1400_p8) target bundleno = 1865 (0x749), region = 48  ;;  %s1529_s21 = sand.u32 (!%p1400_p8), 1, %s1288_s28  }
  0x61   : > { %s928_s10 = sshll.u32 (!%p1400_p8), %s1529_s21, 3  ;;  %s312_s15 = scalar_lea.sflag (!%p1400_p8), [#allocation3], %s1529_s21 }
  0x62   : > { %s315_s24 = scalar_lea.vmem (!%p1400_p8), [#allocation2], %s928_s10  ;;  %p1705_p4 = scmp.ne.s32.totalorder (!%p1400_p8), %s1698_s11, 0 }
  0x67   : > { %1267 = dma.done.wait (%p1705_p4), %s312_s15, 128  }
  0x68   : > { %1269 = vsyncadd (%p1705_p4), %s312_s15, 4294967168  ;;  %p1706_p5 = scmp.eq.s32.totalorder %s1381_s9, 0 }
  0x6a   : > { %1271 = dma.done.wait (%p1706_p5), [#allocation6], 512   ;;  %p1707_p8 = pmov %p1706_p5 }
  0x6b   : > { %v1303_v0 = vmov 0.0   ;;  %vm1304_vm0 = vmmov 0   ;;  %v1094_v1 = vld [vmem:[#allocation5] sm:$0xff]   ;;  %v1095_v2 = vld [vmem:[#allocation5 + $0x8] sm:$0xff]   ;;  %v1549_v3 = vld [vmem:[%s315_s24] sm:$0xff]  ;;  %vm387_vm1 = vcmask 261120  }
  0x6c   : > { %1273 = vsyncadd (%p1707_p8), [#allocation6], 4294966784  ;;  %970 = vmatprep.subr.bf16.mxu0 %v1303_v0  ;;  %974 = vmatprep.mubr.msk.bf16.mxu0 %vm1304_vm0, %v1303_v0  ;;  %v363_v4 = vpack.c.bf16 %v1549_v3, %v1549_v3  ;;  %v933_v5 = vld [vmem:[%s1688_s2] ss:$0 sm:$0xff]  ;;  %s1305_s26 = smov 96   ;;  %s1306_s17 = smov 112  }
  0x6d   : > { %978 = vmatprep.subr.bf16.mxu1 %v1303_v0  ;;  %980 = vmatprep.mubr.msk.bf16.mxu1 %vm1304_vm0, %v1303_v0  ;;  %s1307_s19 = smov 80   ;;  %vm437_vm2 = vcmask 130048   ;;  %vm484_vm3 = vcmask 64512   ;;  %s1308_s16 = smov 64   ;;  %vm503_vm4 = vcmask 1043456   ;;  %v1096_v51 = vld [vmem:[#allocation7] sm:$0xff]  }
  0x6e   : > { %971 = vmatpush3.bf16.msra.mxu0 %v1094_v1  ;;  %s1309_s18 = smov 48   ;;  %s932_s25 = sshll.u32 %s1529_s21, 4  ;;  %v1097_v52 = vld [vmem:[#allocation7 + $0x8] sm:$0xff]  }
  0x6f   : > { %972 = vmatprep.subr.bf16.mxu0 %v1303_v0  ;;  %s1577_s14 = scalar_lea.vmem [#allocation9], %s932_s25  ;;  %s1310_s15 = smov 16  }
  0x70   : > { %s955_s13 = sshll.u32 %s1381_s9, 8  ;;  %p1708_p0 = scmp.ne.s32.totalorder %s1703_s22, 0 }
  0x72   : > { %973 = vmatpush3.bf16.msra.mxu0 %v1095_v2 }
  0x73   : > { %984 = vmatprep.subr.bf16.mxu0 %v1303_v0 }
  0x75   : > { %975 = vmatmul.mubr.msk.bf16.vlgmr.msra.gmra.mrb[0].mxu0 %vm387_vm1, %v363_v4 }
  0x76   : > { %986 = vmatprep.mubr.msk.bf16.mxu0 %vm1304_vm0, %v1303_v0 }
 0x148   : > { %v425_v6 = vpop.f32.mrb[0].mxu0 }
 0x149   : > { %v426_v7 = vadd.f32 %v933_v5, %v425_v6  ;;  %v976_v8 = vpop.f32.mrb[1].mxu0 }
 0x14a   : > { %v428_v9 = vpop.f32.mrb[2].mxu0 }
 0x14b   : > { %v433_v10 = vpack.c.bf16 %v426_v7, %v426_v7  ;;  %v977_v11 = vpop.f32.mrb[3].mxu0  ;;  %v431_v12 = vmul.f32 0.25, %v426_v7 }
 0x14d   : > { %435 = vrot.lane.b32.xlu0 %v433_v10, %s1305_s26  ;;  %v432_v13 = vpack.c.bf16 %v431_v12, %v431_v12  ;;  %s796_s26 = sshll.u32 %s1577_s14, 4  ;;  %s1603_s26 = int_to_ptr.vmem [resolvable:$true] %s796_s26 }
 0x14e   : > { %s1194_s25 = scalar_lea.vmem %s1603_s26, 256 }
 0x14f   : > { %548 = vrot.lane.b32.xlu1 %v432_v13, %s1306_s17  ;;  %p1195_p11 = scmp.ne.s32.totalorder %s1603_s26, %s1194_s25 }
 0x151   : > { %550 = vrot.lane.b32.xlu0 %v433_v10, %s1307_s19  ;;  %p1196_p1 = pnand %p1195_p11, %p1708_p0 }
 0x153   : > { %p1197_p3 = pneg %p1196_p1 }
 0x1bf   : > { %v436_v14 = vpop.permute.xlu0 %435 }
 0x1c0   : > { %v442_v15 = vsel %vm437_vm2, %v436_v14, 0 }
 0x1c1   : > { %979 = vmatpush3.bf16.xpose.msra.mxu1 %v442_v15  ;;  %v549_v18 = vpop.permute.xlu1 %548 }
 0x1c2   : > { %990 = vmatprep.subr.bf16.mxu1 %v1303_v0 }
 0x1c3   : > { %v551_v16 = vpop.permute.xlu0 %550 }
 0x1c4   : > { %v556_v17 = vsel %vm437_vm2, %v551_v16, 0 }
 0x1c8   : > { %981 = vmatmul.mubr.msk.bf16.vlgmr.msra.gmra.mrb[0].mxu1 %vm437_vm2, %v432_v13 }
 0x1c9   : > { %991 = vmatpush3.bf16.xpose.msra.mxu1 %v556_v17  ;;  %992 = vmatprep.mubr.msk.bf16.mxu1 %vm1304_vm0, %v1303_v0 }
 0x1ca   : > { %1002 = vmatprep.subr.bf16.mxu1 %v1303_v0 }
 0x1d0   : > { %993 = vmatmul.mubr.msk.bf16.vlgmr.msra.gmra.mrb[4].mxu1 %vm437_vm2, %v549_v18 }
 0x1d1   : > { %1006 = vmatprep.mubr.msk.bf16.mxu1 %vm1304_vm0, %v1303_v0  ;;  %1003 = vmatpush3.bf16.msra.mxu1 %v1096_v51 }
 0x1d2   : > { %1004 = vmatprep.subr.bf16.mxu1 %v1303_v0 }
 0x1d5   : > { %1005 = vmatpush3.bf16.msra.mxu1 %v1097_v52 }
 0x29b   : > { %v478_v19 = vpop.f32.mrb[0].mxu1 }
 0x29c   : > { %v982_v20 = vpop.f32.mrb[1].mxu1  ;;  %v485_v21 = vsel %vm484_vm3, %v478_v19, -inf }
 0x29d   : > { %486 = vmax.xlane.f32.xlu1 %v485_v21  ;;  %v481_v22 = vpop.f32.mrb[2].mxu1 }
 0x29e   : > { %v983_v23 = vpop.f32.mrb[3].mxu1 }
 0x2a3   : > { %v592_v24 = vpop.f32.mrb[4].mxu1 }
 0x2a4   : > { %v994_v25 = vpop.f32.mrb[5].mxu1  ;;  %v598_v26 = vsel %vm484_vm3, %v592_v24, -inf }
 0x2a5   : > { %599 = vmax.xlane.f32.xlu0 %v598_v26  ;;  %v595_v27 = vpop.f32.mrb[6].mxu1 }
 0x2a6   : > { %v995_v28 = vpop.f32.mrb[7].mxu1 }
 0x32a   : > { %v487_v29 = vpop.xlane.xlu1 %486 }
 0x32b   : > { %v488_v30 = vsub.f32 %v478_v19, %v487_v29 }
 0x32d   : > { %v489_v31 = vmul.f32 1.442695, %v488_v30 }
 0x32f   : > { %1098 = vpow2.f32 %v489_v31 }
 0x332   : > { %v600_v32 = vpop.xlane.xlu0 %599 }
 0x333   : > { %v601_v33 = vsub.f32 %v592_v24, %v600_v32 }
 0x335   : > { %v602_v34 = vmul.f32 1.442695, %v601_v33 }
 0x337   : > { %1100 = vpow2.f32 %v602_v34 }
 0x339   : > { %v1099_v35 = vpop.eup %1098 }
 0x33a   : > { %v491_v36 = vsel %vm484_vm3, %v1099_v35, 0.0 }
 0x33b   : > { %492 = vadd.xlane.f32.xlu0 %v491_v36 }
 0x341   : > { %v1101_v37 = vpop.eup %1100 }
 0x342   : > { %v604_v38 = vsel %vm484_vm3, %v1101_v37, 0.0 }
 0x343   : > { %605 = vadd.xlane.f32.xlu1 %v604_v38 }
 0x351   : > { %498 = vrot.lane.b32.xlu0 %v433_v10, %s1308_s16  ;;  %s1601_s16 = scalar_lea.hbm %s1694_s8, %s955_s13 }
 0x354   : > { %612 = vrot.lane.b32.xlu1 %v433_v10, %s1309_s18  ;;  %s770_s18 = scalar_lea.sflag [#allocation10], %s1529_s21 }
 0x3c8   : > { %v493_v39 = vpop.xlane.xlu0 %492 }
 0x3c9   : > { %1102 = vrcp.f32 %v493_v39 }
 0x3cc   : > { %v499_v40 = vpop.permute.xlu0 %498 }
 0x3cd   : > { %v505_v41 = vsel %vm503_vm4, %v499_v40, 0 }
 0x3ce   : > { %985 = vmatpush3.bf16.msra.mxu0 %v505_v41 }
 0x3cf   : > { %996 = vmatprep.subr.bf16.mxu0 %v1303_v0 }
 0x3d0   : > { %v606_v42 = vpop.xlane.xlu1 %605 }
 0x3d1   : > { %1104 = vrcp.f32 %v606_v42 }
 0x3d3   : > { %v1103_v43 = vpop.eup %1102 }
 0x3d4   : > { %v495_v44 = vmul.f32 %v1103_v43, %v1099_v35  ;;  %v613_v45 = vpop.permute.xlu1 %612 }
 0x3d5   : > { %v618_v47 = vsel %vm503_vm4, %v613_v45, 0 }
 0x3d6   : > { %v497_v46 = vpack.c.bf16 %v495_v44, %v495_v44  ;;  %496 = vst.msk [vmem:[%s1577_s14] sm:$0xff] %vm484_vm3, %v495_v44 }
 0x3d8   : > { %987 = vmatmul.mubr.msk.bf16.vlgmr.msra.gmra.mrb[4].mxu0 %vm484_vm3, %v497_v46 }
 0x3d9   : > { %997 = vmatpush3.bf16.msra.mxu0 %v618_v47  ;;  %998 = vmatprep.mubr.msk.bf16.mxu0 %vm1304_vm0, %v1303_v0  ;;  %v942_v0 = vld [vmem:[%s1690_s4] ss:$0 sm:$0xff] }
 0x3db   : > { %v1105_v48 = vpop.eup %1104 }
 0x3dc   : > { %v608_v49 = vmul.f32 %v1105_v48, %v1101_v37 }
 0x3de   : > { %v611_v50 = vpack.c.bf16 %v608_v49, %v608_v49  ;;  %940 = vst.msk [vmem:[%s1577_s14 + $0x8] sm:$0xff] %vm484_vm3, %v608_v49 }
 0x3e0   : > { %999 = vmatmul.mubr.msk.bf16.vlgmr.msra.gmra.mrb[8].mxu0 %vm484_vm3, %v611_v50 }
 0x4ab   : > { %v541_v53 = vpop.f32.mrb[4].mxu0 }
 0x4ac   : > { %v988_v54 = vpop.f32.mrb[5].mxu0 }
 0x4ad   : > { %v544_v55 = vpop.f32.mrb[6].mxu0 }
 0x4ae   : > { %v989_v56 = vpop.f32.mrb[7].mxu0 }
 0x4b3   : > { %v654_v57 = vpop.f32.mrb[8].mxu0 }
 0x4b4   : > { %661 = vrot.lane.b32.xlu1 %v654_v57, %s1310_s15  ;;  %v1000_v58 = vpop.f32.mrb[9].mxu0  ;;  %s1311_s15 = smov [#allocation9]  }
 0x4b5   : > { %v657_v59 = vpop.f32.mrb[10].mxu0  ;;  %s1198_s24 = sshll.u32 %s1311_s15, 4  ;;  %s1199_s24 = int_to_ptr.vmem [resolvable:$false] %s1198_s24 }
 0x4b6   : > { %v1001_v60 = vpop.f32.mrb[11].mxu0  ;;  %s1200_s14 = scalar_lea.vmem %s1199_s24, 512  ;;  %p1201_p7 = scmp.lt.s32.totalorder %s1603_s26, %s1199_s24 }
 0x4b7   : > { %p1202_p9 = scmp.lt.s32.totalorder %s1200_s14, %s1194_s25 }
 0x4b9   : > { %p1203_p12 = por %p1202_p9, %p1201_p7 }
 0x4bb   : > { %p1204_p2 = pnand %p1203_p12, %p1197_p3 }
 0x526   : > { %v662_v61 = vpop.permute.xlu1 %661 }
 0x527   : > { %v664_v62 = vsel %vm437_vm2, %v541_v53, %v662_v61 }
 0x528   : > { %v665_v63 = vpack.c.bf16 %v664_v62, %v664_v62 }
 0x52a   : > { %1007 = vmatmul.mubr.msk.bf16.vlgmr.msra.gmra.mrb[8].mxu1 %vm387_vm1, %v665_v63 }
 0x5fd   : > { %v726_v1 = vpop.f32.mrb[8].mxu1 }
 0x5fe   : > { %v727_v2 = vadd.f32 %v942_v0, %v726_v1  ;;  %v1008_v4 = vpop.f32.mrb[9].mxu1 }
 0x5ff   : > { %v729_v5 = vpop.f32.mrb[10].mxu1 }
 0x600   : > { %v1009_v6 = vpop.f32.mrb[11].mxu1  ;;  %v732_v7 = vadd.f32 %v727_v2, %v1549_v3 }
 0x602   : > { %v733_v8 = vsel %vm387_vm1, %v732_v7, 0.0 }
 0x603   : > { %734 = vadd.xlane.f32.xlu0 %v733_v8 }
 0x690   : > { %v735_v9 = vpop.xlane.xlu0 %734 }
 0x691   : > { %v737_v10 = vmul.f32 0.03125, %v735_v9 }
 0x693   : > { %v738_v11 = vsub.f32 %v732_v7, %v737_v10 }
 0x695   : > { %v739_v12 = vmul.f32 %v738_v11, %v738_v11 }
 0x697   : > { %v740_v13 = vsel %vm387_vm1, %v739_v12, 0.0 }
 0x698   : > { %741 = vadd.xlane.f32.xlu1 %v740_v13 }
 0x699   : > { %1207 = shalt.err (!%p1204_p2)
}
 0x69a   : > { %s1208_s11 = scalar_lea.hbm %s1601_s16, 256  ;;  %s1212_s19 = scalar_lea.hbm %s1694_s8, 512 }
 0x69b   : > { %p1209_p13 = scmp.ne.s32.totalorder %s1601_s16, %s1208_s11  ;;  %p1213_p4 = scmp.lt.u32.totalorder %s1601_s16, %s1694_s8 }
 0x69c   : > { %p1214_p5 = scmp.lt.u32.totalorder %s1212_s19, %s1208_s11  ;;  %p1216_p11 = scmp.lt.u32.totalorder %s1208_s11, %s1601_s16 }
 0x69d   : > { %p1210_p6 = pnand %p1209_p13, %p1708_p0 }
 0x69e   : > { %p1215_p8 = por %p1214_p5, %p1213_p4 }
 0x69f   : > { %p1211_p10 = pneg %p1210_p6 }
 0x6a0   : > { %p1217_p1 = por %p1216_p11, %p1215_p8 }
 0x6a2   : > { %p1218_p3 = pnand %p1217_p1, %p1211_p10 }
 0x6a4   : > { %1221 = shalt.err (!%p1218_p3)
}
 0x6a5   : > { %s1312_s25 = smov 128   ;;  %s1313_s14 = smov 8   ;;  %v946_v17 = vld [vmem:[%s1691_s5] ss:$0 sm:$0xff] }
 0x6a6   : > { %1021 = dma.vmem_to_hbm [thread:$0]  (%p1708_p0), %s1603_s26, 256, %s1601_s16, %s770_s18, %s1312_s25, %s1312_s25, %s1313_s14  }
 0x6a7   : > { %v947_v19 = vld [vmem:[%s1692_s6] ss:$0 sm:$0xff]  ;;  %s950_s15 = sshll.u32 %s1381_s9, 7  ;;  %s353_s24 = scalar_lea.vmem [#allocation8], %s928_s10 }
 0x6a8   : > { %s783_s26 = sshll.u32 %s353_s24, 4  ;;  %s1641_s25 = scalar_lea.hbm %s1693_s7, %s950_s15  ;;  %s1643_s26 = int_to_ptr.vmem [resolvable:$true] %s783_s26 }
 0x6a9   : > { %s765_s14 = scalar_lea.sflag [#allocation4], %s1529_s21  ;;  %s1222_s11 = scalar_lea.vmem %s1643_s26, 128 }
 0x6aa   : > { %p1223_p7 = scmp.ne.s32.totalorder %s1643_s26, %s1222_s11  ;;  %s1314_s9 = smov [#allocation8]  }
 0x6ab   : > { %s1226_s10 = sshll.u32 %s1314_s9, 4  ;;  %s1227_s10 = int_to_ptr.vmem [resolvable:$false] %s1226_s10 }
 0x6ac   : > { %p1224_p9 = pnand %p1223_p7, %p1708_p0  ;;  %s1228_s13 = scalar_lea.vmem %s1227_s10, 256 }
 0x6ad   : > { %p1229_p2 = scmp.lt.s32.totalorder %s1643_s26, %s1227_s10  ;;  %p1230_p13 = scmp.lt.s32.totalorder %s1228_s13, %s1222_s11 }
 0x6ae   : > { %p1225_p12 = pneg %p1224_p9 }
 0x6af   : > { %p1231_p6 = por %p1230_p13, %p1229_p2 }
 0x6b1   : > { %p1232_p10 = pnand %p1231_p6, %p1225_p12 }
 0x725   : > { %v742_v3 = vpop.xlane.xlu1 %741 }
 0x726   : > { %v743_v14 = vmul.f32 0.03125, %v742_v3 }
 0x728   : > { %v744_v15 = vadd.f32 1e-05, %v743_v14 }
 0x72a   : > { %1106 = vrsqrt.f32 %v744_v15 }
 0x734   : > { %v1107_v16 = vpop.eup %1106 }
 0x735   : > { %v746_v18 = vmul.f32 %v1107_v16, %v738_v11 }
 0x737   : > { %v754_v20 = vmul.f32 %v946_v17, %v746_v18 }
 0x739   : > { %v762_v21 = vadd.f32 %v947_v19, %v754_v20 }
 0x73b   : > { %763 = vst.msk [vmem:[%s353_s24] sm:$0xff] %vm387_vm1, %v762_v21 }
 0x73c   : > { %1235 = shalt.err (!%p1232_p10)
}
 0x73d   : > { %s1236_s21 = scalar_lea.hbm %s1641_s25, 128  ;;  %s1240_s15 = scalar_lea.hbm %s1693_s7, 256 }
 0x73e   : > { %p1237_p4 = scmp.ne.s32.totalorder %s1641_s25, %s1236_s21  ;;  %p1241_p11 = scmp.lt.u32.totalorder %s1641_s25, %s1693_s7 }
 0x73f   : > { %p1242_p1 = scmp.lt.u32.totalorder %s1240_s15, %s1236_s21  ;;  %p1244_p7 = scmp.lt.u32.totalorder %s1236_s21, %s1641_s25 }
 0x740   : > { %p1238_p5 = pnand %p1237_p4, %p1708_p0 }
 0x741   : > { %p1243_p3 = por %p1242_p1, %p1241_p11 }
 0x742   : > { %p1239_p8 = pneg %p1238_p5 }
 0x743   : > { %p1245_p9 = por %p1244_p7, %p1243_p3 }
 0x745   : > { %p1246_p12 = pnand %p1245_p9, %p1239_p8 }
 0x747   : > { %1249 = shalt.err (!%p1246_p12)
}
 0x748   : > { %1020 = dma.vmem_to_hbm [thread:$0]  (%p1708_p0), %s1643_s26, 128, %s1641_s25, %s765_s14  }
 0x749 PF: > { %s811_s18 = sand.u32 1, %s1284_s27   ;;  %p1709_p2 = scmp.ne.s32.totalorder %s1699_s12, 0 }
 0x74a   : > { %p1710_p13 = scmp.ge.s32.totalorder %s1296_s30, 2  ;;  %s812_s11 = scalar_lea.sflag [#allocation4], %s811_s18 }
 0x74c   : > { %p1036_p6 = pnand %p1710_p13, %p1709_p2 }
 0x74e   : > { %1275 = dma.done.wait (!%p1036_p6), %s812_s11, 128  }
 0x74f   : > { %1277 = vsyncadd (!%p1036_p6), %s812_s11, 4294967168  ;;  %s821_s9 = scalar_lea.sflag [#allocation10], %s811_s18 }
 0x750   : > { %1279 = dma.done.wait (!%p1036_p6), %s821_s9, 256  }
 0x751   : > { %1281 = vsyncadd (!%p1036_p6), %s821_s9, 4294967040  ;;  %p26_p0 = scmp.ge.s32.totalorder %s1470_s20, 4   ;;  %s1711_s27 = smov %s1288_s28 }
 0x752   : > { %s1712_s28 = smov %s1292_s29  ;;  %s1713_s29 = smov %s1486_s23 }
 0x753   : > { %s1714_s30 = smov %s1470_s20  ;;  %28 = sbr.rel (!%p26_p0) target bundleno = 8 (0x8), region = 119 }
 0x75a   :  { %826 = vsyncpa [#allocation3], 1 }
 0x75b   :  { %828 = vsyncpa [#allocation3 + $0x1], 1 }
 0x75c   :  { %829 = vsyncpa [#allocation6], 1 }
 0x75d   :  { %830 = vsyncpa [#allocation4], 1 }
 0x75e   :  { %832 = vsyncpa [#allocation4 + $0x1], 1 }
 0x75f   :  { %833 = vsyncpa [#allocation10], 1 }
 0x760   :  { %835 = vsyncpa [#allocation10 + $0x1], 1 }

</bundles_post_ra>
